<compile_context>
chip_gen: v5e
topology: v5e:2x2
jax: 0.10.0
libtpu: 0.0.40
codegen_flags: <defaults>
</compile_context>

<pallas_src>
import jax
import jax.numpy as jnp
from jax.experimental import pallas as pl
from jax.experimental.pallas import tpu as pltpu


def _soft_dice_partial_kernel(x_ref, y_ref, inter_ref, denom_ref):
    """Accumulate per-(b, c) partial sums over the spatial (lane) grid axis.

    x_ref:     (1, C, tile_s) float   probabilities for one batch element
    y_ref:     (1, 1, tile_s) int32   labels for one batch element (-1 = padding)
    inter_ref: (1, C, 1) float32      sum_s (x * onehot)^2   (resident accumulator)
    denom_ref: (1, C, 1) float32      sum_s (x + onehot)     (resident accumulator)
    """
    k = pl.program_id(1)

    @pl.when(k == 0)
    def _():
        inter_ref[...] = jnp.zeros_like(inter_ref)
        denom_ref[...] = jnp.zeros_like(denom_ref)

    x = x_ref[0].astype(jnp.float32)                          # (C, tile_s)
    labels = y_ref[0]                                         # (1, tile_s) int32
    cls = jax.lax.broadcasted_iota(jnp.int32, x.shape, 0)     # (C, tile_s)
    onehot = labels == cls                                    # (C, tile_s) bool (in-kernel)

    x2 = x * x
    inter = jnp.sum(jnp.where(onehot, x2, 0.0), axis=-1, keepdims=True)        # (C, 1)
    den = (jnp.sum(x, axis=-1, keepdims=True)
           + jnp.sum(onehot.astype(jnp.float32), axis=-1, keepdims=True))      # (C, 1)

    inter_ref[...] += inter[None]
    denom_ref[...] += den[None]


def soft_dice_loss(x, y, *, smooth=1.0, smooth_in_nom=1.0):
    """SoftDiceLoss.forward for the default flags.

    x: [B, C, H, W] float probabilities; y: [B, H, W] integer labels in [0, C).
    """
    B, C, H, W = x.shape
    S = H * W
    xf = x.reshape(B, C, S)
    yf = y.astype(jnp.int32).reshape(B, 1, S)

    # ---- lane-tile selection (HBM-bandwidth-bound reduction: big lane tiles) ----
    # Per step we stream a (C, tile_s) x block plus a (1, tile_s) int32 label
    # block; double buffering doubles that. Keep it <= ~8 MiB total so the
    # default scoped-VMEM limits on v5e/v6e/v7x all hold with headroom.
    x_itemsize = jnp.dtype(x.dtype).itemsize
    bytes_per_lane = C * x_itemsize + 4
    per_step_budget = 4 * 1024 * 1024             # x2 (double buffer) => <= 8 MiB
    s_ceil = -(-S // 128) * 128
    tile_cap = max(128, (per_step_budget // bytes_per_lane) // 128 * 128)
    tile_s = min(s_ceil, tile_cap)

    s_pad = -(-S // tile_s) * tile_s
    if s_pad != S:
        # Zero-pad x (adds 0 to both sums); pad labels with -1 so padded lanes
        # never match a class (in particular not class 0).
        xf = jnp.pad(xf, ((0, 0), (0, 0), (0, s_pad - S)))
        yf = jnp.pad(yf, ((0, 0), (0, 0), (0, s_pad - S)), constant_values=-1)

    grid = (B, s_pad // tile_s)

    intersect, denom = pl.pallas_call(
        _soft_dice_partial_kernel,
        out_shape=(jax.ShapeDtypeStruct((B, C, 1), jnp.float32),
                   jax.ShapeDtypeStruct((B, C, 1), jnp.float32)),
        grid_spec=pltpu.PrefetchScalarGridSpec(
            num_scalar_prefetch=0,
            grid=grid,
            in_specs=[
                pl.BlockSpec((1, C, tile_s), lambda b, k: (b, 0, k)),
                pl.BlockSpec((1, 1, tile_s), lambda b, k: (b, 0, k)),
            ],
            out_specs=[
                pl.BlockSpec((1, C, 1), lambda b, k: (b, 0, 0)),
                pl.BlockSpec((1, C, 1), lambda b, k: (b, 0, 0)),
            ],
        ),
        compiler_params=pltpu.CompilerParams(
            dimension_semantics=("parallel", "arbitrary"),
            vmem_limit_bytes=32 * 1024 * 1024,
        ),
    )(xf, yf)

    intersect = intersect[:, :, 0]                               # (B, C)
    denom = denom[:, :, 0]                                       # (B, C)
    per_class = -((2.0 * intersect + jnp.float32(smooth_in_nom))
                  / (denom + jnp.float32(smooth)))
    return jnp.mean(per_class)


def _reference_soft_dice_loss(x, y, *, smooth=1.0, smooth_in_nom=1.0):
    """Plain-JAX reference mirroring the PyTorch module (default flags)."""
    B, C, H, W = x.shape
    y_onehot = (y[:, None, :, :] ==
                jnp.arange(C, dtype=y.dtype)[None, :, None, None]).astype(x.dtype)
    axes = (2, 3)
    intersect = jnp.sum((x * y_onehot) ** 2, axis=axes)
    denom = jnp.sum(x + y_onehot, axis=axes)
    return jnp.mean(-((2.0 * intersect + smooth_in_nom) / (denom + smooth)))


if __name__ == "__main__":
    key = jax.random.PRNGKey(0)
    kx, ky = jax.random.split(key)

    B, C, H, W = 2, 4, 16, 16
    logits = jax.random.normal(kx, (B, C, H, W), dtype=jnp.float32)
    x = jax.nn.softmax(logits, axis=1)    # apply_nonlin=None in the module, so feed
                                          # already-normalized probabilities.
    y = jax.random.randint(ky, (B, H, W), 0, C, dtype=jnp.int32)

    loss = soft_dice_loss(x, y)
    loss = jax.block_until_ready(loss)

    ref = _reference_soft_dice_loss(x, y)
    assert jnp.allclose(loss, ref, atol=1e-5, rtol=1e-5), (loss, ref)

    print("KERNEL_OK")
</pallas_src>

<mosaic_0001>
module attributes {stable_mosaic.version = 11 : i64} {
  func.func @_soft_dice_partial_kernel(%arg0: i32, %arg1: i32, %arg2: memref<1x4x256xf32, #tpu.memory_space<vmem>>, %arg3: memref<1x1x256xi32, #tpu.memory_space<vmem>>, %arg4: memref<1x4x1xf32, #tpu.memory_space<vmem>>, %arg5: memref<1x4x1xf32, #tpu.memory_space<vmem>>) attributes {dimension_semantics = [#tpu.dimension_semantics<parallel>, #tpu.dimension_semantics<arbitrary>], iteration_bounds = array<i64: 2, 1>, scalar_prefetch = 0 : i64, scratch_operands = 0 : i64, tpu.core_type = #tpu.core_type<tc>, window_params = [{transform_indices = @transform_0, window_bounds = array<i64: 1, 4, 256>}, {transform_indices = @transform_1, window_bounds = array<i64: 1, 1, 256>}, {transform_indices = @transform_2, window_bounds = array<i64: 1, 4, 1>}, {transform_indices = @transform_3, window_bounds = array<i64: 1, 4, 1>}]} {
    %c0_i32 = arith.constant 0 : i32
    %0 = arith.cmpi eq, %arg1, %c0_i32 : i32
    %1 = arith.extui %0 : i1 to i32
    %c0_i32_0 = arith.constant 0 : i32
    %2 = arith.cmpi ne, %1, %c0_i32_0 : i32
    scf.if %2 {
      %cst_21 = arith.constant 0.000000e+00 : f32
      %30 = vector.broadcast %cst_21 : f32 to vector<1x4x1xf32>
      %c0_22 = arith.constant 0 : index
      %c0_23 = arith.constant 0 : index
      %c0_24 = arith.constant 0 : index
      %31 = vector.load %arg4[%c0_22, %c0_23, %c0_24] : memref<1x4x1xf32, #tpu.memory_space<vmem>>, vector<1x4x1xf32>
      tpu.vector_store %arg4[%c0_22, %c0_23, %c0_24], %30 {strides = array<i32>} : memref<1x4x1xf32, #tpu.memory_space<vmem>>, vector<1x4x1xf32>,
      %cst_25 = arith.constant 0.000000e+00 : f32
      %32 = vector.broadcast %cst_25 : f32 to vector<1x4x1xf32>
      %c0_26 = arith.constant 0 : index
      %c0_27 = arith.constant 0 : index
      %c0_28 = arith.constant 0 : index
      %33 = vector.load %arg5[%c0_26, %c0_27, %c0_28] : memref<1x4x1xf32, #tpu.memory_space<vmem>>, vector<1x4x1xf32>
      tpu.vector_store %arg5[%c0_26, %c0_27, %c0_28], %32 {strides = array<i32>} : memref<1x4x1xf32, #tpu.memory_space<vmem>>, vector<1x4x1xf32>,
    } else {
    }
    %c0 = arith.constant 0 : index
    %c0_1 = arith.constant 0 : index
    %c0_2 = arith.constant 0 : index
    %3 = vector.load %arg2[%c0, %c0_1, %c0_2] : memref<1x4x256xf32, #tpu.memory_space<vmem>>, vector<1x4x256xf32>
    %4 = vector.shape_cast %3 : vector<1x4x256xf32> to vector<4x256xf32>
    %c0_3 = arith.constant 0 : index
    %c0_4 = arith.constant 0 : index
    %c0_5 = arith.constant 0 : index
    %5 = vector.load %arg3[%c0_3, %c0_4, %c0_5] : memref<1x1x256xi32, #tpu.memory_space<vmem>>, vector<1x1x256xi32>
    %6 = vector.shape_cast %5 : vector<1x1x256xi32> to vector<1x256xi32>
    %7 = tpu.iota {dimensions = array<i32: 0>} : vector<4x256xi32>
    %8 = vector.broadcast %6 : vector<1x256xi32> to vector<4x256xi32>
    %9 = arith.cmpi eq, %8, %7 : vector<4x256xi32>
    %10 = arith.mulf %4, %4 : vector<4x256xf32>
    %cst = arith.constant 0.000000e+00 : f32
    %11 = vector.broadcast %cst : f32 to vector<4x256xf32>
    %12 = arith.select %9, %10, %11 : vector<4x256xi1>, vector<4x256xf32>
    %cst_6 = arith.constant dense<0.000000e+00> : vector<4xf32>
    %13 = vector.multi_reduction <add>, %12, %cst_6 [1] : vector<4x256xf32> to vector<4xf32>
    %14 = vector.shape_cast %13 : vector<4xf32> to vector<4x1xf32>
    %cst_7 = arith.constant dense<0.000000e+00> : vector<4xf32>
    %15 = vector.multi_reduction <add>, %4, %cst_7 [1] : vector<4x256xf32> to vector<4xf32>
    %16 = vector.shape_cast %15 : vector<4xf32> to vector<4x1xf32>
    %17 = arith.extui %9 : vector<4x256xi1> to vector<4x256xi32>
    %18 = arith.sitofp %17 : vector<4x256xi32> to vector<4x256xf32>
    %cst_8 = arith.constant dense<0.000000e+00> : vector<4xf32>
    %19 = vector.multi_reduction <add>, %18, %cst_8 [1] : vector<4x256xf32> to vector<4xf32>
    %20 = vector.shape_cast %19 : vector<4xf32> to vector<4x1xf32>
    %21 = arith.addf %16, %20 : vector<4x1xf32>
    %c0_9 = arith.constant 0 : index
    %c0_10 = arith.constant 0 : index
    %c0_11 = arith.constant 0 : index
    %22 = vector.load %arg4[%c0_9, %c0_10, %c0_11] : memref<1x4x1xf32, #tpu.memory_space<vmem>>, vector<1x4x1xf32>
    %23 = vector.shape_cast %14 : vector<4x1xf32> to vector<1x4x1xf32>
    %24 = arith.addf %22, %23 : vector<1x4x1xf32>
    %c0_12 = arith.constant 0 : index
    %c0_13 = arith.constant 0 : index
    %c0_14 = arith.constant 0 : index
    %25 = vector.load %arg4[%c0_12, %c0_13, %c0_14] : memref<1x4x1xf32, #tpu.memory_space<vmem>>, vector<1x4x1xf32>
    tpu.vector_store %arg4[%c0_12, %c0_13, %c0_14], %24 {strides = array<i32>} : memref<1x4x1xf32, #tpu.memory_space<vmem>>, vector<1x4x1xf32>,
    %c0_15 = arith.constant 0 : index
    %c0_16 = arith.constant 0 : index
    %c0_17 = arith.constant 0 : index
    %26 = vector.load %arg5[%c0_15, %c0_16, %c0_17] : memref<1x4x1xf32, #tpu.memory_space<vmem>>, vector<1x4x1xf32>
    %27 = vector.shape_cast %21 : vector<4x1xf32> to vector<1x4x1xf32>
    %28 = arith.addf %26, %27 : vector<1x4x1xf32>
    %c0_18 = arith.constant 0 : index
    %c0_19 = arith.constant 0 : index
    %c0_20 = arith.constant 0 : index
    %29 = vector.load %arg5[%c0_18, %c0_19, %c0_20] : memref<1x4x1xf32, #tpu.memory_space<vmem>>, vector<1x4x1xf32>
    tpu.vector_store %arg5[%c0_18, %c0_19, %c0_20], %28 {strides = array<i32>} : memref<1x4x1xf32, #tpu.memory_space<vmem>>, vector<1x4x1xf32>,
    return
  }
  func.func @transform_0(%arg0: i32, %arg1: i32) -> (i32, i32, i32) {
    %c0_i32 = arith.constant 0 : i32
    %c0_i32_0 = arith.constant 0 : i32
    return %arg0, %c0_i32, %arg1 : i32, i32, i32
  }
  func.func @transform_1(%arg0: i32, %arg1: i32) -> (i32, i32, i32) {
    %c0_i32 = arith.constant 0 : i32
    %c0_i32_0 = arith.constant 0 : i32
    return %arg0, %c0_i32, %arg1 : i32, i32, i32
  }
  func.func @transform_2(%arg0: i32, %arg1: i32) -> (i32, i32, i32) {
    %c0_i32 = arith.constant 0 : i32
    %c0_i32_0 = arith.constant 0 : i32
    %c0_i32_1 = arith.constant 0 : i32
    return %arg0, %c0_i32, %c0_i32_0 : i32, i32, i32
  }
  func.func @transform_3(%arg0: i32, %arg1: i32) -> (i32, i32, i32) {
    %c0_i32 = arith.constant 0 : i32
    %c0_i32_0 = arith.constant 0 : i32
    %c0_i32_1 = arith.constant 0 : i32
    return %arg0, %c0_i32, %c0_i32_0 : i32, i32, i32
  }
}

</mosaic_0001>

<bundles_post_ra>
// kernel: tpu_custom_call.1
= control target key start
LH: loop header
LB: loop body
LE: loop exit
PB: predicated region body
PF: predicated region fallthrough
CT: control target
= control target key end

     0   :  { %9 = vsyncpa [#allocation3], 0  ;;  %s797_s0 = inlined_call_operand.hbm [shape: f32[2,4,256], index: 0, kind: input, shape index: {}]   ;;  %s798_s1 = inlined_call_operand.hbm [shape: s32[2,1,256], index: 1, kind: input, shape index: {}]   ;;  %s799_s2 = inlined_call_operand.vmem [shape: f32[2,4,1], index: 2, kind: output, shape index: {0}]   ;;  %s800_s3 = inlined_call_operand.vmem [shape: f32[2,4,1], index: 3, kind: output, shape index: {1}]  }
   0x1   :  { %11 = vsyncpa [#allocation3 + $0x1], 0 }
   0x2   :  { %12 = vsyncpa [#allocation5], 0 }
   0x3   :  { %14 = vsyncpa [#allocation5 + $0x1], 0  ;;  %s668_s12 = smov 0   ;;  %s670_s13 = smov 0  }
   0x4   :  { %s672_s14 = smov 0   ;;  %s674_s15 = smov 0  }
   0x5   :  { %s676_s16 = smov 0   ;;  %s678_s17 = smov 0  }
   0x6 LB: > { %s451_s18 = sadd.s32 4294967295, %s645_s17   ;;  %s32_s19 = sadd.s32 1, %s641_s16  ;;  %s645_s17 = sphi %s678_s17, %s20_s17   ;;  %s641_s16 = sphi %s676_s16, %s812_s16   ;;  %s637_s15 = sphi %s674_s15, %s811_s15   ;;  %s633_s14 = sphi %s672_s14, %s810_s14   ;;  %s629_s13 = sphi %s670_s13, %s809_s13   ;;  %s625_s12 = sphi %s668_s12, %s808_s12  }
   0x7   : > { %p34_p0 = scmp.ge.s32.totalorder %s32_s19, 2  ;;  %s41_s20 = sadd.s32 1, %s633_s14 }
   0x8   : > { %p48_p1 = scmp.ne.s32.totalorder %s633_s14, %s629_s13  ;;  %p49_p2 = scmp.eq.s32.totalorder %s645_s17, 0 }
   0x9   : > { %s814_s19 = smov (%p34_p0, %s32_s19), 0  ;;  %p54_p4 = scmp.ne.s32.totalorder %s629_s13, %s625_s12 }
   0xa   : > { %p704_p3 = por %p49_p2, %p48_p1  ;;  %s36_s22 = ssub.s32 %s641_s16, %s814_s19 }
   0xb   : > { %p55_p5 = scmp.eq.s32.totalorder %s451_s18, 0  ;;  %p39_p6 = scmp.eq.s32.totalorder %s36_s22, 0 }
   0xc   : > { %p481_p8 = scmp.lt.s32.totalorder %s645_s17, 2  ;;  %s158_s25 = sand.u32 1, %s633_s14  }
   0xd   : > { %p711_p7 = por %p55_p5, %p54_p4  ;;  %s469_s26 = sshll.u32 %s641_s16, 3 }
   0xe   : > { %s717_s24 = scalar_select %p39_p6, %s633_s14, %s41_s20  }
   0xf   : > { %s455_s27 = sshll.u32 %s158_s25, 3  ;;  %s169_s30 = scalar_lea.hbm %s797_s0, %s469_s26 }
  0x10   : > { %s171_s4 = sshll.u32 %s169_s30, 4  ;;  %s162_s5 = scalar_lea.vmem [#allocation2], %s455_s27  ;;  %s172_s4 = int_to_ptr.hbm [resolvable:$true] %s171_s4 }
  0x11   : > { %s173_s6 = sshll.u32 %s162_s5, 4  ;;  %p726_p9 = pnand %p481_p8, %p704_p3  ;;  %s174_s6 = int_to_ptr.vmem [resolvable:$true] %s173_s6 }
  0x12   : > { %p460_p10 = scmp.ge.s32.totalorder %s645_s17, 1  ;;  %p199_p11 = scmp.lt.s32.totalorder %s645_s17, 3 }
  0x13   : > { %s458_s8 = sshll.u32 %s158_s25, 1  ;;  %s159_s9 = scalar_lea.sflag [#allocation3], %s158_s25 }
  0x14   : > { %477 = dma.hbm_to_vmem [thread:$0]  (!%p726_p9), %s172_s4, 128, %s174_s6, %s159_s9  }
  0x15   : > { %p200_p12 = pnand %p460_p10, %p199_p11  ;;  %s459_s10 = sshll.u32 %s641_s16, 1 }
  0x16   : > { %s184_s11 = scalar_lea.vmem [#allocation4], %s458_s8  ;;  %s190_s21 = scalar_lea.hbm %s798_s1, %s459_s10 }
  0x17   : > { %s194_s12 = sshll.u32 %s184_s11, 4  ;;  %s192_s22 = sshll.u32 %s190_s21, 4  ;;  %s195_s12 = int_to_ptr.vmem [resolvable:$true] %s194_s12  ;;  %s193_s22 = int_to_ptr.hbm [resolvable:$true] %s192_s22 }
  0x18   : > { %s181_s26 = scalar_lea.sflag [#allocation5], %s158_s25  ;;  %203 = sbr.rel (%p200_p12) target bundleno = 184 (0xb8), region = 28 }
  0x19   : > { %480 = dma.hbm_to_vmem [thread:$0]  (!%p726_p9), %s193_s22, 32, %s195_s12, %s181_s26  }
  0x1a   : > { %s205_s27 = sand.u32 (!%p200_p12), 1, %s629_s13  }
  0x1b   : > { %s461_s28 = sshll.u32 (!%p200_p12), %s205_s27, 3  ;;  %s206_s29 = scalar_lea.sflag (!%p200_p12), [#allocation3], %s205_s27 }
  0x1c   : > { %s209_s30 = scalar_lea.vmem (!%p200_p12), [#allocation2], %s461_s28 }
  0x1d   : > { %616 = dma.done.wait (%p711_p7), %s206_s29, 128  }
  0x1e   : > { %618 = vsyncadd (%p711_p7), %s206_s29, 4294967168  ;;  %s462_s4 = sshll.u32 %s205_s27, 1  ;;  %s216_s5 = scalar_lea.sflag [#allocation5], %s205_s27 }
  0x1f   : > { %s219_s6 = scalar_lea.vmem [#allocation4], %s462_s4 }
  0x20   : > { %620 = dma.done.wait (%p711_p7), %s216_s5, 32  }
  0x21   : > { %622 = vsyncadd (%p711_p7), %s216_s5, 4294967264  ;;  %v268_v0 = vld [vmem:[%s209_s30] sm:$0xff]  ;;  %v270_v2 = vlaneseq  ;;  %v269_v3 = vld [vmem:[%s219_s6] sm:$0x3]  ;;  %vm285_vm2 = vcmask 1043456   ;;  %v647_v21 = vmov 0.0  }
  0x22   : > { %v276_v1 = vmul.f32 %v268_v0, %v268_v0  ;;  %v272_v5 = vperm.slane %v269_v3, 0  ;;  %v273_v6 = vperm.slane %v269_v3, 1  ;;  %p253_p13 = scmp.lt.s32.totalorder %s637_s15, 1  ;;  %vm265_vm3 = vcmask 3072  }
  0x23   : > { %v271_v4 = vshrl.u32 %v270_v2, 7 }
  0x24   : > { %278 = vst [vmem:[#allocation1] ss:$2 sm:$0xff] %v276_v1  ;;  %s816_s15 = smov (!%p253_p13, %s637_s15), 1 }
  0x25   : > { %vm749_vm0 = vcmp.eq.s32.totalorder %v272_v5, %v271_v4  ;;  %vm753_vm1 = vcmp.eq.s32.totalorder %v273_v6, %v271_v4  ;;  %s463_s23 = sshll.u32 %s816_s15, 2 }
  0x26   : > { %v465_v22 = vsel %vm749_vm0, 1.0, %v647_v21  ;;  %v466_v23 = vsel %vm753_vm1, 1.0, %v647_v21  ;;  %s260_s8 = scalar_lea.vmem %s800_s3, %s463_s23  ;;  %s256_s11 = scalar_lea.vmem %s799_s2, %s463_s23 }
  0x27   : > { %v306_v24 = vsel %vm285_vm2, %v465_v22, 0.0  ;;  %v307_v25 = vsel %vm285_vm2, %v466_v23, 0.0  ;;  %267 = vst.msk [vmem:[%s260_s8] sm:$0xf] %vm265_vm3, %v647_v21 }
  0x28   : > { %v308_v26 = vadd.f32 %v307_v25, %v306_v24  ;;  %266 = vst.msk [vmem:[%s256_s11] sm:$0xf] %vm265_vm3, %v647_v21 }
  0x2b   : > { %v279_v7 = vld.sshfl [vmem:[#allocation1] sm:$0xff pattern:$0x75316420]  ;;  %v280_v8 = vld.sshfl [vmem:[#allocation1 + $0x8] sm:$0xff pattern:$0x75316420] }
  0x2c   : > { %292 = vst [vmem:[#allocation1] ss:$2 sm:$0xff] %v268_v0  ;;  %v283_v11 = vsel %vm749_vm0, %v279_v7, 0.0  ;;  %v284_v12 = vsel %vm753_vm1, %v280_v8, 0.0 }
  0x2d   : > { %v286_v13 = vsel %vm285_vm2, %v283_v11, 0.0  ;;  %v287_v14 = vsel %vm285_vm2, %v284_v12, 0.0 }
  0x2e   : > { %v288_v15 = vadd.f32 %v287_v14, %v286_v13  ;;  %v316_v32 = vld [vmem:[%s260_s8] sm:$0xf] }
  0x2f   : > { %v312_v27 = vld [vmem:[%s256_s11] sm:$0xf] }
  0x30   : > { %289 = vadd.xlane.f32.xlu1 %v288_v15 }
  0x33   : > { %v293_v16 = vld.sshfl [vmem:[#allocation1] sm:$0xff pattern:$0x75316420]  ;;  %v294_v17 = vld.sshfl [vmem:[#allocation1 + $0x8] sm:$0xff pattern:$0x75316420] }
  0x34   : > { %v297_v18 = vsel %vm285_vm2, %v293_v16, 0.0  ;;  %v298_v19 = vsel %vm285_vm2, %v294_v17, 0.0 }
  0x35   : > { %v299_v20 = vadd.f32 %v298_v19, %v297_v18 }
  0x37   : > { %300 = vadd.xlane.f32.xlu0 %v299_v20 }
  0x3f   : > { %309 = vadd.xlane.f32.xlu0 %v308_v26 }
  0xa3   : > { %v290_v28 = vpop.xlane.xlu1 %289 }
  0xa4   : > { %v313_v29 = vadd.f32 %v312_v27, %v290_v28 }
  0xa6   : > { %315 = vst.msk [vmem:[%s256_s11] sm:$0xf] %vm265_vm3, %v313_v29 }
  0xaa   : > { %v301_v30 = vpop.xlane.xlu0 %300 }
  0xb2   : > { %v310_v31 = vpop.xlane.xlu0 %309 }
  0xb3   : > { %v311_v33 = vadd.f32 %v310_v31, %v301_v30 }
  0xb5   : > { %v317_v34 = vadd.f32 %v316_v32, %v311_v33 }
  0xb7   : > { %318 = vst.msk [vmem:[%s260_s8] sm:$0xf] %vm265_vm3, %v317_v34 }
  0xb8 PF: > { %s20_s17 = sadd.s32 1, %s645_s17   ;;  %s808_s12 = smov %s629_s13 }
  0xb9   : > { %p17_p0 = scmp.ge.s32.totalorder %s20_s17, 4   ;;  %s809_s13 = smov %s633_s14 }
  0xba   : > { %s810_s14 = smov %s717_s24  ;;  %s811_s15 = smov %s641_s16 }
  0xbb   : > { %s812_s16 = smov %s814_s19  ;;  %19 = sbr.rel (!%p17_p0) target bundleno = 6 (0x6), region = 97 }
  0xc0   :  { %352 = vsyncpa [#allocation3], 1 }
  0xc1   :  { %354 = vsyncpa [#allocation3 + $0x1], 1 }
  0xc2   :  { %355 = vsyncpa [#allocation5], 1 }
  0xc3   :  { %357 = vsyncpa [#allocation5 + $0x1], 1 }

</bundles_post_ra>
